<compile_context>
chip_gen: v7x
topology: tpu7x:2x2x1
jax: 0.10.0
libtpu: 0.0.40
codegen_flags: <defaults>
</compile_context>

<pallas_src>
import math

import jax
import jax.numpy as jnp
from jax.experimental import pallas as pl
from jax.experimental.pallas import tpu as pltpu

_TWO_PI = 2.0 * math.pi


def _gfp_kernel(x_ref, w_ref, o_ref):
    # x_ref: (tm, d_in) row tile, w_ref: (d_in, half) resident constant block,
    # o_ref: (tm, 2*half) = [sin(proj) | cos(proj)]
    d_in = x_ref.shape[1]
    if d_in <= 4:
        # Tiny contraction (e.g. scalar timesteps): VPU broadcast FMA; the MXU
        # would be <1% utilized and only add push/result-FIFO latency.
        x = x_ref[...].astype(jnp.float32)
        w = w_ref[...].astype(jnp.float32)
        proj = x[:, 0:1] * w[0:1, :]
        for k in range(1, d_in):
            proj = proj + x[:, k : k + 1] * w[k : k + 1, :]
    else:
        proj = jnp.dot(x_ref[...], w_ref[...], preferred_element_type=jnp.float32)
    proj = _TWO_PI * proj
    # Single lane-dense store (one unmasked-as-possible vst) instead of two
    # half-width masked partial stores.
    o_ref[...] = jnp.concatenate([jnp.sin(proj), jnp.cos(proj)], axis=-1).astype(
        o_ref.dtype
    )


def _round_up(a, b):
    return ((a + b - 1) // b) * b


def _vmem_budget_bytes():
    # 75% of per-core VMEM: ~48 MiB on v7x (64 MiB/TC), ~96 MiB on v5e/v6e.
    try:
        cap = int(pltpu.get_tpu_info().vmem_capacity_bytes)
    except Exception:
        cap = 64 * 1024 * 1024  # conservative fallback (v7x-sized)
    return int(cap * 3 // 4)


def gaussian_fourier_projection_vector(x, W):
    """Pallas implementation of GaussianFourierProjectionVector.forward.

    x: (..., input_dim) array.
    W: (input_dim, embed_dim // 2) fixed Gaussian buffer (already scaled).
    Returns (..., embed_dim) with embed_dim = 2 * W.shape[1].
    """
    d_in = x.shape[-1]
    assert W.shape[0] == d_in, "W must have shape (input_dim, embed_dim // 2)"
    half = W.shape[1]
    embed_dim = 2 * half

    lead = x.shape[:-1]
    B = 1
    for d in lead:
        B *= d
    x2d = x.reshape(B, d_in)

    x_isz = jnp.dtype(x.dtype).itemsize
    w_isz = jnp.dtype(W.dtype).itemsize
    sub = max(8, 32 // x_isz)  # sublane packing: 8 f32 / 16 bf16 / 32 int8

    # Per-step VMEM model: double-buffered x and out tiles, f32 proj + sin/cos
    # temps, plus the resident (double-buffered) W block.
    budget = _vmem_budget_bytes()
    w_bytes = 2 * d_in * half * w_isz
    per_row = (
        2 * d_in * x_isz          # x tile, double-buffered
        + 2 * embed_dim * x_isz   # out tile, double-buffered
        + half * 4                # proj f32 temp
        + embed_dim * 4           # sin/cos/concat f32 temps (headroom)
    )
    avail = max(budget - w_bytes, per_row * sub)
    tm = max(sub, (avail // per_row) // sub * sub)
    tm = min(tm, _round_up(B, sub))  # never larger than the (sublane-padded) batch
    grid = (pl.cdiv(B, tm),)  # ragged last block: Pallas masks its writeback

    # TODO(synk): if embed_dim grows very large in production, split the output
    # into separate sin/cos arrays and add a feature-dim grid axis so tm and
    # embed_dim don't fight over VMEM (matters mainly on v7x's 64 MiB).
    out2d = pl.pallas_call(
        _gfp_kernel,
        out_shape=jax.ShapeDtypeStruct((B, embed_dim), x.dtype),
        grid_spec=pltpu.PrefetchScalarGridSpec(
            num_scalar_prefetch=0,
            grid=grid,
            in_specs=[
                pl.BlockSpec((tm, d_in), lambda i: (i, 0)),
                pl.BlockSpec((d_in, half), lambda i: (0, 0)),  # W stays resident
            ],
            out_specs=pl.BlockSpec((tm, embed_dim), lambda i: (i, 0)),
        ),
        compiler_params=pltpu.CompilerParams(
            dimension_semantics=("parallel",),  # shards across TCs on v7x
            vmem_limit_bytes=int(budget),
        ),
    )(x2d, W)

    return out2d.reshape(*lead, embed_dim)


if __name__ == "__main__":
    key = jax.random.PRNGKey(0)
    kx, kw, kx2, kx3, kw3 = jax.random.split(key, 5)

    def ref(x, W):
        proj = _TWO_PI * jnp.einsum(
            "...i,ij->...j", x, W, precision=jax.lax.Precision.HIGHEST
        )
        return jnp.concatenate([jnp.sin(proj), jnp.cos(proj)], axis=-1)

    # Keep |2*pi * x @ W| at O(1-10): sin/cos of huge angles would amplify
    # benign matmul rounding and make an elementwise check meaningless.
    input_dim, embed_dim, scale = 32, 64, 30.0
    batch, seq = 2, 8
    x = 0.05 * jax.random.normal(kx, (batch, seq, input_dim), dtype=jnp.float32)
    W = scale * jax.random.normal(kw, (input_dim, embed_dim // 2), dtype=jnp.float32)

    y = jax.block_until_ready(gaussian_fourier_projection_vector(x, W))
    assert y.shape == (batch, seq, embed_dim) and y.dtype == x.dtype
    assert jnp.allclose(y, ref(x, W), atol=2e-2, rtol=2e-2), "case 1 mismatch"

    # Ragged row count (B = 5, not a multiple of the 8-row tile) -> exercises
    # the no-pad path where Pallas masks the last block's writeback.
    x2 = 0.05 * jax.random.normal(kx2, (5, input_dim), dtype=jnp.float32)
    y2 = jax.block_until_ready(gaussian_fourier_projection_vector(x2, W))
    assert y2.shape == (5, embed_dim)
    assert jnp.allclose(y2, ref(x2, W), atol=2e-2, rtol=2e-2), "case 2 mismatch"

    # Tiny input_dim -> exercises the VPU (non-MXU) contraction path.
    x3 = 0.05 * jax.random.normal(kx3, (3, 4, 2), dtype=jnp.float32)
    W3 = scale * jax.random.normal(kw3, (2, 8), dtype=jnp.float32)
    y3 = jax.block_until_ready(gaussian_fourier_projection_vector(x3, W3))
    assert y3.shape == (3, 4, 16)
    assert jnp.allclose(y3, ref(x3, W3), atol=2e-2, rtol=2e-2), "case 3 mismatch"

    print("KERNEL_OK")
</pallas_src>

<mosaic_0001>
module attributes {stable_mosaic.version = 11 : i64} {
  func.func @_gfp_kernel(%arg0: i32, %arg1: memref<16x32xf32, #tpu.memory_space<vmem>>, %arg2: memref<32x32xf32, #tpu.memory_space<vmem>>, %arg3: memref<16x64xf32, #tpu.memory_space<vmem>>) attributes {dimension_semantics = [#tpu.dimension_semantics<parallel>], iteration_bounds = array<i64: 1>, scalar_prefetch = 0 : i64, scratch_operands = 0 : i64, tpu.core_type = #tpu.core_type<tc>, window_params = [{transform_indices = @transform_0, window_bounds = array<i64: 16, 32>}, {pipeline_mode = #tpu.pipeline_mode<synchronous>, transform_indices = @transform_1, window_bounds = array<i64: 32, 32>}, {transform_indices = @transform_2, window_bounds = array<i64: 16, 64>}]} {
    %c0 = arith.constant 0 : index
    %c0_0 = arith.constant 0 : index
    %0 = vector.load %arg1[%c0, %c0_0] : memref<16x32xf32, #tpu.memory_space<vmem>>, vector<16x32xf32>
    %c0_1 = arith.constant 0 : index
    %c0_2 = arith.constant 0 : index
    %1 = vector.load %arg2[%c0_1, %c0_2] : memref<32x32xf32, #tpu.memory_space<vmem>>, vector<32x32xf32>
    %cst = arith.constant dense<0.000000e+00> : vector<16x32xf32>
    %2 = tpu.matmul %0, %1, %cst {dimension_numbers = #tpu.dot_dimension_numbers<[1], [0], [0], [1], [0, 0, 1, 1], [], []>} : vector<16x32xf32>, vector<32x32xf32>, vector<16x32xf32> -> vector<16x32xf32>
    %cst_3 = arith.constant 6.28318548 : f32
    %3 = vector.broadcast %cst_3 : f32 to vector<16x32xf32>
    %4 = arith.mulf %3, %2 : vector<16x32xf32>
    %5 = math.sin %4 : vector<16x32xf32>
    %6 = math.cos %4 : vector<16x32xf32>
    %7 = tpu.concatenate %5, %6 in 1 : vector<16x32xf32>, vector<16x32xf32> -> vector<16x64xf32>
    %c0_4 = arith.constant 0 : index
    %c0_5 = arith.constant 0 : index
    %8 = vector.load %arg3[%c0_4, %c0_5] : memref<16x64xf32, #tpu.memory_space<vmem>>, vector<16x64xf32>
    tpu.vector_store %arg3[%c0_4, %c0_5], %7 {strides = array<i32>} : memref<16x64xf32, #tpu.memory_space<vmem>>, vector<16x64xf32>,
    return
  }
  func.func @transform_0(%arg0: i32) -> (i32, i32) {
    %c0_i32 = arith.constant 0 : i32
    %c0_i32_0 = arith.constant 0 : i32
    return %arg0, %c0_i32 : i32, i32
  }
  func.func @transform_1(%arg0: i32) -> (i32, i32) {
    %c0_i32 = arith.constant 0 : i32
    %c0_i32_0 = arith.constant 0 : i32
    %c0_i32_1 = arith.constant 0 : i32
    return %c0_i32, %c0_i32_0 : i32, i32
  }
  func.func @transform_2(%arg0: i32) -> (i32, i32) {
    %c0_i32 = arith.constant 0 : i32
    %c0_i32_0 = arith.constant 0 : i32
    return %arg0, %c0_i32 : i32, i32
  }
}

</mosaic_0001>

<bundles_post_ra>
// kernel: tpu_custom_call.1
= control target key start
LH: loop header
LB: loop body
LE: loop exit
PB: predicated region body
PF: predicated region fallthrough
CT: control target
= control target key end

     0   :  { %7 = vsyncpa [#allocation3], 0  ;;  %s875_s0 = inlined_call_operand.hbm [shape: f32[16,32], index: 0, kind: input, shape index: {}]   ;;  %s876_s1 = inlined_call_operand.hbm [shape: f32[32,32], index: 1, kind: input, shape index: {}]   ;;  %s877_s2 = inlined_call_operand.hbm [shape: f32[16,64], index: 2, kind: output, shape index: {}]  }
   0x1   :  { %8 = vsyncpa [#allocation6], 0 }
   0x2   :  { %9 = vsyncpa [#allocation4], 0  ;;  %s718_s9 = smov [#allocation2]   ;;  %s646_s13 = scalar_lea.hbm %s875_s0, 256 }
   0x3   :  { %s15_s10 = sshll.u32 %s718_s9, 4  ;;  %p647_p0 = scmp.ne.s32.totalorder %s875_s0, %s646_s13  ;;  %s16_s10 = int_to_ptr.vmem [resolvable:$true] %s15_s10 }
   0x4   :  { %p650_p1 = scmp.lt.u32.totalorder %s646_s13, %s875_s0 }
   0x6   :  { %p652_p2 = pnand %p650_p1, %p647_p0 }
   0x8   :  { %655 = shalt.err (!%p652_p2)
}
   0x9   :  { %s656_s18 = scalar_lea.vmem %s16_s10, 256  ;;  %p661_p4 = scmp.lt.s32.totalorder %s16_s10, %s16_s10 }
   0xa   :  { %p657_p3 = scmp.ne.s32.totalorder %s16_s10, %s656_s18  ;;  %p662_p5 = scmp.lt.s32.totalorder %s656_s18, %s656_s18 }
   0xc   :  { %p663_p6 = por %p662_p5, %p661_p4 }
   0xe   :  { %p664_p7 = pnand %p663_p6, %p657_p3 }
  0x10   :  { %667 = shalt.err (!%p664_p7)
}
  0x11   :  { %s719_s19 = smov 128   ;;  %s720_s20 = smov 8  }
  0x12   :  { %21 = dma.hbm_to_vmem [thread:$0]  %s875_s0, 256, %s16_s10, [#allocation3], %s719_s19, %s719_s19, %s720_s20  }
  0x13   :  { %s721_s23 = smov [#allocation5]   ;;  %s668_s27 = scalar_lea.hbm %s876_s1, 512 }
  0x14   :  { %s27_s24 = sshll.u32 %s721_s23, 4  ;;  %p669_p8 = scmp.ne.s32.totalorder %s876_s1, %s668_s27  ;;  %s28_s24 = int_to_ptr.vmem [resolvable:$true] %s27_s24 }
  0x15   :  { %p672_p9 = scmp.lt.u32.totalorder %s668_s27, %s876_s1 }
  0x17   :  { %p674_p10 = pnand %p672_p9, %p669_p8 }
  0x19   :  { %677 = shalt.err (!%p674_p10)
}
  0x1a   :  { %s678_s4 = scalar_lea.vmem %s28_s24, 512  ;;  %p683_p12 = scmp.lt.s32.totalorder %s28_s24, %s28_s24 }
  0x1b   :  { %p679_p11 = scmp.ne.s32.totalorder %s28_s24, %s678_s4  ;;  %p684_p13 = scmp.lt.s32.totalorder %s678_s4, %s678_s4 }
  0x1d   :  { %p685_p0 = por %p684_p13, %p683_p12 }
  0x1f   :  { %p686_p1 = pnand %p685_p0, %p679_p11 }
  0x21   :  { %689 = shalt.err (!%p686_p1)
}
  0x22   :  { %33 = dma.hbm_to_vmem [thread:$0]  %s876_s1, 512, %s28_s24, [#allocation6], %s719_s19, %s719_s19, %s720_s20  }
  0x23   :  { %712 = dma.done.wait [#allocation3], 256  }
  0x24   :  { %713 = vsyncadd [#allocation3], 4294967040 }
  0x25   :  { %714 = dma.done.wait [#allocation6], 512  }
  0x26   :  { %715 = vsyncadd [#allocation6], 4294966784  ;;  %vm46_vm0 = vcmask 261120   ;;  %v42_v0 = vld [vmem:[#allocation5] sm:$0xff]  ;;  %v43_v1 = vld [vmem:[#allocation5 + $0x8] sm:$0xff]  ;;  %s728_s1 = smov 32  }
  0x27   :  { %v44_v2 = vld [vmem:[#allocation5 + $0x10] sm:$0xff]  ;;  %v610_v3 = vpack.c.bf16 %v43_v1, %v42_v0  ;;  %v45_v4 = vld [vmem:[#allocation5 + $0x18] sm:$0xff]  ;;  %v722_v32 = vmov 683565275   ;;  %v723_v34 = vmov 2475754826  }
  0x28   :  { %v40_v5 = vld [vmem:[#allocation2] sm:$0xff]  ;;  %v614_v6 = vpack.c.bf16 %v45_v4, %v44_v2  ;;  %v41_v7 = vld [vmem:[#allocation2 + $0x8] sm:$0xff]  ;;  %v724_v37 = vmov 2131351028   ;;  %v725_v39 = vmov 2102212464  }
  0x29   :  { %607 = vmatprep.mubr.msk.f32.mxu0 %vm46_vm0, %v40_v5  ;;  %611 = vmatprep.subr.bf16.mxu0 %v610_v3  ;;  %v726_v41 = vmov 920167782   ;;  %v727_v48 = vmov 1326507024   ;;  %s729_s6 = smov [#allocation7]  }
  0x2a   :  { %613 = vmatpush3.bf16.msra.mxu0 %v610_v3  ;;  %s562_s7 = sshll.u32 %s729_s6, 4  ;;  %s563_s7 = int_to_ptr.vmem [resolvable:$true] %s562_s7 }
  0x2b   :  { %615 = vmatprep.subr.bf16.mxu0 %v614_v6  ;;  %s690_s8 = scalar_lea.vmem %s563_s7, 256  ;;  %p695_p3 = scmp.lt.s32.totalorder %s563_s7, %s563_s7 }
  0x2c   :  { %p691_p2 = scmp.ne.s32.totalorder %s563_s7, %s690_s8  ;;  %p696_p4 = scmp.lt.s32.totalorder %s690_s8, %s690_s8 }
  0x2e   :  { %617 = vmatpush3.bf16.msra.mxu0 %v614_v6  ;;  %p697_p5 = por %p696_p4, %p695_p3 }
  0x30   :  { %p698_p6 = pnand %p697_p5, %p691_p2 }
  0x31   :  { %608 = vmatmul.mubr.msk.f32.vlgmr.msra.gmra.mrb[0].mxu0 %vm46_vm0, %v41_v7 }
 0x104   :  { %v609_v8 = vpop.f32.mrb[0].mxu0 }
 0x105   :  { %v777_v9 = vmul.f32 6.2831855, %v609_v8  ;;  %v119_v10 = vpop.f32.mrb[1].mxu0 }
 0x106   :  { %v779_v11 = vmul.f32 6.2831855, %v119_v10 }
 0x107   :  { %v234_v12 = vand.u32 2147483647, %v777_v9  ;;  %v237_v13 = vand.u32 2139095040, %v777_v9  ;;  %vm236_vm15 = vcmp.lt.s32.totalorder %v777_v9, 0 }
 0x108   :  { %v133_v14 = vand.u32 2139095040, %v779_v11  ;;  %v130_v23 = vand.u32 2147483647, %v779_v11 }
 0x109   :  { %v238_v15 = vshrl.u32 %v237_v13, 23  ;;  %v241_v16 = vand.u32 8388607, %v234_v12 }
 0x10a   :  { %v134_v17 = vshrl.u32 %v133_v14, 23  ;;  %v793_v30 = vand.u32 8388607, %v130_v23 }
 0x10b   :  { %v581_v18 = vadd.s32 4294967169, %v238_v15  ;;  %v242_v21 = vor.u32 8388608, %v241_v16 }
 0x10c   :  { %v577_v19 = vadd.s32 4294967169, %v134_v17 }
 0x10d   :  { %v244_v20 = vadd.s32 1, %v581_v18  ;;  %v787_v28 = vshll.u32 %v242_v21, 8  ;;  %v138_v18 = vor.u32 8388608, %v793_v30 }
 0x10e   :  { %v140_v22 = vadd.s32 1, %v577_v19 }
 0x10f   :  { %vm245_vm1 = vcmp.gt.s32.totalorder %v244_v20, 0 }
 0x110   :  { %v246_v24 = vsel %vm245_vm1, %v244_v20, 0  ;;  %vm141_vm2 = vcmp.gt.s32.totalorder %v140_v22, 0  ;;  %vm235_vm1 = vcmp.le.f32.partialorder %v234_v12, 0.7853982 }
 0x111   :  { %v247_v25 = vshrl.u32 %v246_v24, 5  ;;  %v248_v26 = vand.u32 31, %v246_v24  ;;  %v142_v27 = vsel %vm141_vm2, %v140_v22, 0  ;;  %vm132_vm2 = vcmp.lt.s32.totalorder %v779_v11, 0 }
 0x112   :  { %v789_v29 = vshrl.u32 %v142_v27, 5  ;;  %v144_v36 = vand.u32 31, %v142_v27 }
 0x113   :  { %v249_v31 = vsub.s32 32, %v248_v26  ;;  %v251_v33 = vshll.u32 %v722_v32, %v248_v26  ;;  %v254_v35 = vshll.u32 %v723_v34, %v248_v26  ;;  %v257_v38 = vshll.u32 %v724_v37, %v248_v26 }
 0x114   :  { %v260_v40 = vshll.u32 %v725_v39, %v248_v26  ;;  %v263_v42 = vshll.u32 %v726_v41, %v248_v26  ;;  %vm266_vm3 = vcmp.lt.s32.totalorder %v247_v25, 1  ;;  %vm267_vm4 = vcmp.lt.s32.totalorder %v247_v25, 2 }
 0x115   :  { %v252_v43 = vshrl.u32 %v723_v34, %v249_v31  ;;  %v255_v44 = vshrl.u32 %v724_v37, %v249_v31  ;;  %v258_v45 = vshrl.u32 %v725_v39, %v249_v31  ;;  %v250_v46 = vshrl.u32 %v722_v32, %v249_v31 }
 0x116   :  { %v261_v47 = vshrl.u32 %v726_v41, %v249_v31  ;;  %v264_v49 = vshrl.u32 %v727_v48, %v249_v31  ;;  %vm268_vm5 = vcmp.lt.s32.totalorder %v247_v25, 3  ;;  %v145_v53 = vsub.s32 32, %v144_v36 }
 0x117   :  { %v253_v50 = vor.u32 %v252_v43, %v251_v33  ;;  %v256_v51 = vor.u32 %v255_v44, %v254_v35  ;;  %v259_v52 = vor.u32 %v258_v45, %v257_v38  ;;  %vm269_vm6 = vcmp.lt.s32.totalorder %v247_v25, 4 }
 0x118   :  { %v262_v54 = vor.u32 %v261_v47, %v260_v40  ;;  %v265_v55 = vor.u32 %v264_v49, %v263_v42  ;;  %v156_v56 = vshll.u32 %v725_v39, %v144_v36  ;;  %v157_v0 = vshrl.u32 %v726_v41, %v145_v53 }
 0x119   :  { %v270_v57 = vsel %vm266_vm3, %v250_v46, %v253_v50  ;;  %v271_v58 = vsel %vm269_vm6, %v259_v52, 2102212464  ;;  %v274_v59 = vsel %vm266_vm3, %v253_v50, %v256_v51  ;;  %v278_v60 = vsel %vm266_vm3, %v256_v51, %v259_v52 }
 0x11a   :  { %v272_v61 = vsel %vm268_vm5, %v256_v51, %v271_v58  ;;  %v275_v62 = vsel %vm269_vm6, %v262_v54, 920167782  ;;  %v279_v63 = vsel %vm269_vm6, %v265_v55, 1326507024  ;;  %v160_v4 = vshrl.u32 %v727_v48, %v145_v53 }
 0x11b   :  { %v273_v1 = vsel %vm267_vm4, %v270_v57, %v272_v61  ;;  %v276_v2 = vsel %vm268_vm5, %v259_v52, %v275_v62  ;;  %v280_v3 = vsel %vm268_vm5, %v262_v54, %v279_v63  ;;  %v158_v7 = vor.u32 %v157_v0, %v156_v56 }
 0x11c   :  { %v277_v5 = vsel %vm267_vm4, %v274_v59, %v276_v2  ;;  %v281_v6 = vsel %vm267_vm4, %v278_v60, %v280_v3  ;;  %v159_v8 = vshll.u32 %v726_v41, %v144_v36  ;;  %v289_v16 = vmul.u32 %v787_v28, %v273_v1 }
 0x11d   :  { %v807_v10 = vmul.u32.u64.low %v787_v28, %v281_v6  ;;  %v808_v13 = vmul.u32.u64.high %v787_v28, %v281_v6, %v807_v10  ;;  %v811_v14 = vmul.u32.u64.low %v787_v28, %v277_v5  ;;  %v812_v15 = vmul.u32.u64.high %v787_v28, %v277_v5, %v811_v14 }
 0x11e   :  { %v161_v17 = vor.u32 %v160_v4, %v159_v8  ;;  %vm165_vm7 = vcmp.lt.s32.totalorder %v789_v29, 4  ;;  %v147_v19 = vshll.u32 %v722_v32, %v144_v36  ;;  %v148_v20 = vshrl.u32 %v723_v34, %v145_v53 }
 0x11f   :  { %v151_v21 = vshrl.u32 %v724_v37, %v145_v53  ;;  %v150_v24 = vshll.u32 %v723_v34, %v144_v36  ;;  %v153_v25 = vshll.u32 %v724_v37, %v144_v36  ;;  %v154_v26 = vshrl.u32 %v725_v39, %v145_v53 }
 0x120   :  { %v175_v22 = vsel %vm165_vm7, %v161_v17, 1326507024  ;;  %vm291_vm8 = vc.u32 %v808_v13, %v811_v14  ;;  %v292_v27 = vadd.s32 1, %v812_v15  ;;  %v171_v28 = vsel %vm165_vm7, %v158_v7, 920167782 }
 0x121   :  { %v149_v30 = vor.u32 %v148_v20, %v147_v19  ;;  %v146_v31 = vshrl.u32 %v722_v32, %v145_v53  ;;  %v152_v33 = vor.u32 %v151_v21, %v150_v24  ;;  %v155_v35 = vor.u32 %v154_v26, %v153_v25 }
 0x122   :  { %vm164_vm9 = vcmp.lt.s32.totalorder %v789_v29, 3  ;;  %v293_v38 = vsel %vm291_vm8, %v292_v27, %v812_v15  ;;  %vm162_vm10 = vcmp.lt.s32.totalorder %v789_v29, 1  ;;  %vm163_vm11 = vcmp.lt.s32.totalorder %v789_v29, 2 }
 0x123   :  { %v176_v34 = vsel %vm164_vm9, %v158_v7, %v175_v22  ;;  %v294_v36 = vadd.s32 %v293_v38, %v289_v16  ;;  %v167_v37 = vsel %vm165_vm7, %v155_v35, 2102212464  ;;  %v170_v39 = vsel %vm162_vm10, %v149_v30, %v152_v33 }
 0x124   :  { %v172_v40 = vsel %vm164_vm9, %v155_v35, %v171_v28  ;;  %v174_v41 = vsel %vm162_vm10, %v152_v33, %v155_v35  ;;  %v178_v42 = vshll.u32 %v138_v18, 8  ;;  %v166_v44 = vsel %vm162_vm10, %v146_v31, %v149_v30 }
 0x125   :  { %v173_v32 = vsel %vm163_vm11, %v170_v39, %v172_v40  ;;  %v295_v43 = vadd.s32 536870912, %v294_v36  ;;  %v168_v45 = vsel %vm164_vm9, %v152_v33, %v167_v37  ;;  %v177_v46 = vsel %vm163_vm11, %v174_v41, %v176_v34 }
 0x126   :  { %v835_v47 = vmul.u32.u64.low %v178_v42, %v177_v46  ;;  %v836_v48 = vmul.u32.u64.high %v178_v42, %v177_v46, %v835_v47  ;;  %v838_v49 = vmul.u32.u64.low %v178_v42, %v173_v32  ;;  %v839_v50 = vmul.u32.u64.high %v178_v42, %v173_v32, %v838_v49 }
 0x127   :  { %v296_v51 = vshrl.u32 %v295_v43, 30  ;;  %v169_v52 = vsel %vm163_vm11, %v166_v44, %v168_v45  ;;  %v290_v3 = vadd.s32 %v811_v14, %v808_v13  ;;  %vm131_vm3 = vcmp.le.f32.partialorder %v130_v23, 0.7853982 }
 0x128   :  { %vm187_vm12 = vc.u32 %v836_v48, %v838_v49  ;;  %v188_v54 = vadd.s32 1, %v839_v50  ;;  %v185_v56 = vmul.u32 %v178_v42, %v169_v52  ;;  %v186_v13 = vadd.s32 %v838_v49, %v836_v48 }
 0x129   :  { %v297_v53 = vshll.u32 %v296_v51, 30  ;;  %v320_v25 = vsub.s32 4, %v296_v51  ;;  %vm326_vm10 = vweird.f32 %v777_v9 }
 0x12a   :  { %v189_v57 = vsel %vm187_vm12, %v188_v54, %v839_v50 }
 0x12b   :  { %v298_v55 = vsub.s32 %v294_v36, %v297_v53  ;;  %v190_v59 = vadd.s32 %v189_v57, %v185_v56  ;;  %v321_v36 = vsel %vm236_vm15, %v320_v25, %v296_v51 }
 0x12c   :  { %v323_v40 = vsel %vm235_vm1, 0, %v321_v36 }
 0x12d   :  { %v300_v58 = vsub.s32 0, %v298_v55  ;;  %v191_v61 = vadd.s32 536870912, %v190_v59  ;;  %v327_v44 = vadd.s32 3, %v323_v40  ;;  %v534_v48 = vand.u32 3, %v323_v40 }
 0x12f   :  { %v582_v60 = vmin.u32 %v300_v58, %v298_v55  ;;  %v192_v63 = vshrl.u32 %v191_v61, 30  ;;  %v328_v47 = vand.u32 3, %v327_v44  ;;  %vm535_vm5 = vcmp.lt.s32.totalorder %v534_v48, 2 }
 0x130   :  { %vm539_vm6 = vcmp.eq.s32.totalorder %v534_v48, 2  ;;  %vm536_vm8 = vcmp.eq.s32.totalorder %v534_v48, 0 }
 0x131   :  { %v302_v62 = vclz %v582_v60  ;;  %v193_v1 = vshll.u32 %v192_v63, 30  ;;  %v216_v43 = vsub.s32 4, %v192_v63  ;;  %vm333_vm4 = vcmp.eq.s32.totalorder %v328_v47, 2 }
 0x132   :  { %vm330_vm7 = vcmp.eq.s32.totalorder %v328_v47, 0  ;;  %vm329_vm9 = vcmp.lt.s32.totalorder %v328_v47, 2 }
 0x133   :  { %v583_v0 = vadd.s32 4294967294, %v302_v62  ;;  %v194_v29 = vsub.s32 %v190_v59, %v193_v1  ;;  %v217_v46 = vsel %vm132_vm2, %v216_v43, %v192_v63 }
 0x134   :  { %v219_v52 = vsel %vm131_vm3, 0, %v217_v46 }
 0x135   :  { %vm584_vm13 = vcmp.lt.s32.totalorder %v583_v0, 0  ;;  %v196_v6 = vsub.s32 0, %v194_v29  ;;  %v223_v56 = vadd.s32 3, %v219_v52 }
 0x136   :  { %v305_v2 = vsel %vm584_vm13, 0, %v583_v0  ;;  %v431_v0 = vand.u32 3, %v219_v52 }
 0x137   :  { %v306_v4 = vsub.s32 32, %v305_v2  ;;  %v310_v5 = vsub.s32 4294967266, %v305_v2  ;;  %v307_v7 = vshll.u32 %v298_v55, %v305_v2  ;;  %v578_v15 = vmin.u32 %v196_v6, %v194_v29 }
 0x138   :  { %v224_v63 = vand.u32 3, %v223_v56  ;;  %vm436_vm12 = vcmp.eq.s32.totalorder %v431_v0, 2 }
 0x139   :  { %v308_v8 = vshrl.u32 %v290_v3, %v306_v4  ;;  %v311_v10 = vadd.s32 127, %v310_v5  ;;  %v198_v18 = vclz %v578_v15 }
 0x13a   :  { %vm229_vm11 = vcmp.eq.s32.totalorder %v224_v63, 2  ;;  %vm226_vm13 = vcmp.eq.s32.totalorder %v224_v63, 0 }
 0x13b   :  { %v309_v16 = vor.u32 %v308_v8, %v307_v7  ;;  %v312_v17 = vshll.u32 %v311_v10, 23  ;;  %v579_v20 = vadd.s32 4294967294, %v198_v18 }
 0x13d   :  { %v313_v19 = vor.u32 4788187, %v312_v17  ;;  %v316_v22 = vcvt.s32.f32 %v309_v16  ;;  %vm580_vm14 = vcmp.lt.s32.totalorder %v579_v20, 0 }
 0x13e   :  { %v201_v24 = vsel %vm580_vm14, 0, %v579_v20  ;;  %vm433_vm14 = vcmp.eq.s32.totalorder %v431_v0, 0 }
 0x13f   :  { %v314_v21 = vand.u32 2147483647, %v313_v19  ;;  %v202_v14 = vsub.s32 32, %v201_v24  ;;  %v206_v27 = vsub.s32 4294967266, %v201_v24  ;;  %v203_v30 = vshll.u32 %v194_v29, %v201_v24 }
 0x141   :  { %v317_v26 = vmul.f32 %v316_v22, %v314_v21  ;;  %v204_v31 = vshrl.u32 %v186_v13, %v202_v14  ;;  %v207_v33 = vadd.s32 127, %v206_v27 }
 0x143   :  { %v318_v28 = vxor.u32 2147483648, %v317_v26  ;;  %v205_v38 = vor.u32 %v204_v31, %v203_v30  ;;  %v208_v34 = vshll.u32 %v207_v33, 23 }
 0x145   :  { %v319_v35 = vsel %vm236_vm15, %v318_v28, %v317_v26  ;;  %v209_v39 = vor.u32 4788187, %v208_v34  ;;  %v212_v41 = vcvt.s32.f32 %v205_v38  ;;  %vm225_vm15 = vcmp.lt.s32.totalorder %v224_v63, 2 }
 0x146   :  { %v322_v37 = vsel %vm235_vm1, %v777_v9, %v319_v35  ;;  %vm432_vm1 = vcmp.lt.s32.totalorder %v431_v0, 2 }
 0x147   :  { %638 = vcosq.f32 %v322_v37  ;;  %v210_v32 = vand.u32 2147483647, %v209_v39 }
 0x148   :  { %640 = vsinq.f32 %v322_v37 }
 0x149   :  { %v213_v42 = vmul.f32 %v212_v41, %v210_v32 }
 0x14b   :  { %v214_v45 = vxor.u32 2147483648, %v213_v42 }
 0x14d   :  { %v215_v12 = vsel %vm132_vm2, %v214_v45, %v213_v42  ;;  %vm222_vm2 = vweird.f32 %v779_v11 }
 0x14e   :  { %v218_v49 = vsel %vm131_vm3, %v779_v11, %v215_v12  ;;  %vm554_vm3 = vcmask 523264  }
 0x14f   :  { %642 = vcosq.f32 %v218_v49 }
 0x150   :  { %644 = vsinq.f32 %v218_v49 }
 0x151   :  { %v639_v50 = vpop.eup %638 }
 0x152   :  { %v641_v51 = vpop.eup %640  ;;  %v334_v53 = vxor.u32 2147483648, %v639_v50 }
 0x153   :  { %v331_v54 = vxor.u32 2147483648, %v641_v51 }
 0x154   :  { %v335_v55 = vsel %vm333_vm4, %v334_v53, %v641_v51  ;;  %v541_v23 = vsel %vm539_vm6, %v334_v53, %v641_v51 }
 0x155   :  { %v332_v57 = vsel %vm330_vm7, %v639_v50, %v331_v54  ;;  %v538_v58 = vsel %vm536_vm8, %v639_v50, %v331_v54 }
 0x156   :  { %v336_v59 = vsel %vm329_vm9, %v332_v57, %v335_v55  ;;  %v542_v60 = vsel %vm535_vm5, %v538_v58, %v541_v23 }
 0x157   :  { %v337_v61 = vsel %vm326_vm10, nan, %v336_v59  ;;  %v543_v62 = vsel %vm326_vm10, nan, %v542_v60 }
 0x159   :  { %v643_v1 = vpop.eup %642 }
 0x15a   :  { %v645_v29 = vpop.eup %644  ;;  %v230_v2 = vxor.u32 2147483648, %v643_v1 }
 0x15b   :  { %v227_v3 = vxor.u32 2147483648, %v645_v29 }
 0x15c   :  { %v438_v4 = vsel %vm436_vm12, %v230_v2, %v645_v29  ;;  %v231_v5 = vsel %vm229_vm11, %v230_v2, %v645_v29 }
 0x15d   :  { %v435_v6 = vsel %vm433_vm14, %v643_v1, %v227_v3  ;;  %v228_v9 = vsel %vm226_vm13, %v643_v1, %v227_v3 }
 0x15e   :  { %v439_v7 = vsel %vm432_vm1, %v435_v6, %v438_v4  ;;  %v232_v8 = vsel %vm225_vm15, %v228_v9, %v231_v5 }
 0x15f   :  { %v440_v10 = vsel %vm222_vm2, nan, %v439_v7  ;;  %v233_v15 = vsel %vm222_vm2, nan, %v232_v8 }
 0x160   :  { %546 = vrot.lane.b32.xlu0 %v440_v10, %s728_s1 }
 0x164   :  { %548 = vrot.lane.b32.xlu0 %v543_v62, %s728_s1 }
 0x1d2   :  { %v547_v16 = vpop.permute.xlu0 %546 }
 0x1d3   :  { %v552_v17 = vsel %vm46_vm0, %v233_v15, %v547_v16 }
 0x1d4   :  { %555 = vst.msk [vmem:[#allocation7] sm:$0xff] %vm554_vm3, %v552_v17 }
 0x1d6   :  { %v549_v18 = vpop.permute.xlu0 %548 }
 0x1d7   :  { %v553_v19 = vsel %vm46_vm0, %v337_v61, %v549_v18 }
 0x1d8   :  { %556 = vst.msk [vmem:[#allocation7 + $0x8] sm:$0xff] %vm554_vm3, %v553_v19 }
 0x1d9   :  { %701 = shalt.err (!%p698_p6)
}
 0x1da   :  { %s702_s11 = scalar_lea.hbm %s877_s2, 256 }
 0x1db   :  { %p703_p7 = scmp.ne.s32.totalorder %s877_s2, %s702_s11  ;;  %p706_p8 = scmp.lt.u32.totalorder %s702_s11, %s877_s2 }
 0x1dd   :  { %p708_p9 = pnand %p706_p8, %p703_p7 }
 0x1df   :  { %711 = shalt.err (!%p708_p9)
}
 0x1e0   :  { %568 = dma.vmem_to_hbm [thread:$0]  %s563_s7, 256, %s877_s2, [#allocation4], %s719_s19, %s719_s19, %s720_s20  }
 0x1e1   :  { %716 = dma.done.wait [#allocation4], 256  }
 0x1e2   :  { %717 = vsyncadd [#allocation4], 4294967040 }
 0x1e3   :  { %572 = vsyncpa [#allocation3], 1 }
 0x1e4   :  { %573 = vsyncpa [#allocation6], 1 }
 0x1e5   :  { %574 = vsyncpa [#allocation4], 1 }

</bundles_post_ra>
